<compile_context>
chip_gen: v7x
topology: tpu7x:2x2x1
jax: 0.10.0
libtpu: 0.0.40
codegen_flags: <defaults>
</compile_context>

<pallas_src>
import functools

import numpy as np

import jax
import jax.numpy as jnp
from jax import lax
from jax.experimental import pallas as pl
from jax.experimental.pallas import tpu as pltpu


# ---------------------------------------------------------------------------
# Fused kernel (one grid step = Nb images):
#   1x1 align conv -> per-(N,C) mask -> 3x3 conv -> ReLU -> 3x3 conv ->
#   partial sum((new_fea - preds_T)^2), plus partial sum((x_hat_S-x_hat_T)^2)
#   for the same Nb images.  Everything lives at (C, H*W): channels on the
#   sublanes, the full spatial extent on the 128-lane axis.
# ---------------------------------------------------------------------------
def _make_fused_kernel(H, W, Ct, Nb):
    HW = H * W
    # roll semantics: out[p] = in[(p - shift) mod HW]; we want out[p] =
    # in[p + dy*W + dx], i.e. shift = -(dy*W + dx) mod HW.
    shifts = [(-(dy * W + dx)) % HW for dy in (-1, 0, 1) for dx in (-1, 0, 1)]

    def kernel(xs_ref, xt_ref, xhs_ref, xht_ref, mask_ref, tapm_ref,
               wa_ref, ba_ref, w1_ref, b1_ref, w2_ref, b2_ref,
               feat_sse_ref, out_sse_ref):
        f32 = jnp.float32
        wa = wa_ref[...].astype(f32)        # (Ct, Cs)
        ba = ba_ref[...].astype(f32)        # (Ct, 1)
        w1 = w1_ref[...].astype(f32)        # (Ct, 9*Ct)
        b1 = b1_ref[...].astype(f32)
        w2 = w2_ref[...].astype(f32)
        b2 = b2_ref[...].astype(f32)
        tapm = tapm_ref[...]                # (9, HW) 0/1 boundary masks

        # TODO(synk): cast rolled windows / weights to bf16 (keeping
        # preferred_element_type=f32) once channel counts make this MXU-bound;
        # irrelevant at Ct=8 where the kernel is overhead-bound.
        def conv3x3(f, w2d, bias):
            # Accumulate over the three dy groups so only 3 rolled copies are
            # live (K = 3*Ct per matmul) -> ~3x lower peak VMEM/vreg pressure
            # than a single (9*Ct, HW) im2col at real image sizes.
            acc = None
            for g in range(3):
                cols = []
                for t in range(3 * g, 3 * g + 3):
                    s = shifts[t]
                    win = f if s == 0 else pltpu.roll(f, shift=s, axis=1)
                    if t != 4:                        # centre tap: no boundary
                        win = win * tapm[t:t + 1, :]  # zero-padding semantics
                    cols.append(win)
                grp = jnp.concatenate(cols, axis=0)              # (3*Ct, HW)
                wg = w2d[:, 3 * g * Ct:(3 * g + 3) * Ct]         # (Ct, 3*Ct)
                p = jnp.dot(wg, grp, preferred_element_type=f32)
                acc = p if acc is None else acc + p
            return acc + bias

        feat_sse = f32(0.0)
        out_sse = f32(0.0)
        for b in range(Nb):                 # static unroll over images / step
            x = xs_ref[b].astype(f32)                            # (Cs, HW)
            aligned = jnp.dot(wa, x, preferred_element_type=f32) + ba
            feat = aligned * mask_ref[b]                         # (Ct,1) bcast
            hidden = jnp.maximum(conv3x3(feat, w1, b1), 0.0)
            new_fea = conv3x3(hidden, w2, b2)                    # (Ct, HW)
            d = new_fea - xt_ref[b].astype(f32)
            feat_sse = feat_sse + jnp.sum(d * d)
            # fused x_hat SSE: no separate kernel launch, no HBM padding
            dx = xhs_ref[b].astype(f32) - xht_ref[b].astype(f32)
            out_sse = out_sse + jnp.sum(dx * dx)

        # Full (1, 8, 128) lane-dense blocks filled with the scalar partials
        # -> single unmasked stores; wrapper reads [:, 0, 0] and sums.
        feat_sse_ref[...] = jnp.zeros(feat_sse_ref.shape, f32) + feat_sse
        out_sse_ref[...] = jnp.zeros(out_sse_ref.shape, f32) + out_sse

    return kernel


def _choose_images_per_step(n, per_image_bytes, budget_bytes=8 << 20):
    """Largest Nb such that Nb | n, the per-step input block fits the VMEM
    budget, and (for v7x's two TensorCores) >= 2 grid steps remain when n>=2."""
    cap = max(1, budget_bytes // max(per_image_bytes, 1))
    nb = 1
    for cand in range(1, n + 1):
        if n % cand:
            continue
        if cand > cap:
            continue
        if n >= 2 and n // cand < 2:
            continue
        nb = cand
    return nb


def fused_distill_partials(preds_S, preds_T, x_hat_S, x_hat_T, mask, params):
    """Per-grid-step partial SSEs.

    Returns (feat_sse_parts, out_sse_parts), each of shape (steps,):
      feat_sse_parts[s] = sum((generation(mask*align(preds_S)) - preds_T)^2)
      out_sse_parts[s]  = sum((x_hat_S - x_hat_T)^2)
    over the Nb images owned by grid step s.
    """
    N, Cs, H, W = preds_S.shape
    Ct = preds_T.shape[1]
    HW = H * W
    Cx = x_hat_S.shape[1]
    HWx = x_hat_S.shape[2] * x_hat_S.shape[3]

    # Metadata-only reshapes: native NCHW byte layout, spatial on the lanes.
    xs = preds_S.reshape(N, Cs, HW)
    xt = preds_T.reshape(N, Ct, HW)
    xhs = x_hat_S.reshape(N, Cx, HWx)
    xht = x_hat_T.reshape(N, Cx, HWx)
    mk = mask.reshape(N, Ct, 1).astype(jnp.float32)

    # 0/1 tap boundary masks (zero padding), built once at trace time with
    # numpy -> baked constant; hoisted out of the kernel body.
    lanes = np.arange(HW)
    col, row = lanes % W, lanes // W
    tm = []
    for dy in (-1, 0, 1):
        for dx in (-1, 0, 1):
            m = np.ones(HW, np.float32)
            if dy == -1:
                m *= (row >= 1)
            if dy == 1:
                m *= (row <= H - 2)
            if dx == -1:
                m *= (col >= 1)
            if dx == 1:
                m *= (col <= W - 2)
            tm.append(m)
    tapmask = jnp.asarray(np.stack(tm), dtype=jnp.float32)       # (9, HW)

    per_image_bytes = 4 * (Cs * HW + Ct * HW + 2 * Cx * HWx)
    nb = _choose_images_per_step(N, per_image_bytes)
    steps = N // nb
    # NOTE: for real image sizes additionally tile H with a 2-row halo per
    # step; the per-step working set below must fit v7x's 64 MiB VMEM.
    vmem_limit = int(min(64 << 20, max(32 << 20, 6 * nb * per_image_bytes)))

    kernel = _make_fused_kernel(H, W, Ct, nb)
    feat_parts, out_parts = pl.pallas_call(
        kernel,
        out_shape=(jax.ShapeDtypeStruct((steps, 8, 128), jnp.float32),
                   jax.ShapeDtypeStruct((steps, 8, 128), jnp.float32)),
        grid=(steps,),
        in_specs=[
            pl.BlockSpec((nb, Cs, HW), lambda s: (s, 0, 0)),     # student feats
            pl.BlockSpec((nb, Ct, HW), lambda s: (s, 0, 0)),     # teacher feats
            pl.BlockSpec((nb, Cx, HWx), lambda s: (s, 0, 0)),    # x_hat_S
            pl.BlockSpec((nb, Cx, HWx), lambda s: (s, 0, 0)),    # x_hat_T
            pl.BlockSpec((nb, Ct, 1), lambda s: (s, 0, 0)),      # MGD mask
            pl.BlockSpec((9, HW), lambda s: (0, 0)),             # tap masks
            pl.BlockSpec((Ct, Cs), lambda s: (0, 0)),            # align W
            pl.BlockSpec((Ct, 1), lambda s: (0, 0)),             # align b
            pl.BlockSpec((Ct, 9 * Ct), lambda s: (0, 0)),        # gen conv1 W
            pl.BlockSpec((Ct, 1), lambda s: (0, 0)),             # gen conv1 b
            pl.BlockSpec((Ct, 9 * Ct), lambda s: (0, 0)),        # gen conv2 W
            pl.BlockSpec((Ct, 1), lambda s: (0, 0)),             # gen conv2 b
        ],
        out_specs=(pl.BlockSpec((1, 8, 128), lambda s: (s, 0, 0)),
                   pl.BlockSpec((1, 8, 128), lambda s: (s, 0, 0))),
        compiler_params=pltpu.CompilerParams(
            dimension_semantics=("parallel",),        # steps are independent
            vmem_limit_bytes=vmem_limit),
    )(xs, xt, xhs, xht, mk, tapmask,
      params["wa"], params["ba"], params["w1"], params["b1"],
      params["w2"], params["b2"])
    return feat_parts[:, 0, 0], out_parts[:, 0, 0]


# ---------------------------------------------------------------------------
# Full DistillationLoss forward (glue in plain JAX)
# ---------------------------------------------------------------------------
def distillation_loss(preds_S, preds_T, x_hat_S, x_hat_T, params, mask,
                      hyperprior_lambda, alpha=0.5, beta=0.5,
                      mgd_alpha=0.0003):
    """preds_* / x_hat_* arrive NCHW, exactly like the PyTorch module.

    TODO(synk): the module's in-forward torch.rand mask is replaced by the
    host-supplied `mask` input, and the student_ch == teacher_ch identity
    branch is not specialised (pass an identity 1x1 `wa` / zero `ba` there).
    """
    N, Ct, H, W = preds_T.shape
    feat_parts, out_parts = fused_distill_partials(
        preds_S, preds_T, x_hat_S, x_hat_T, mask, params)

    mse_out = jnp.sum(out_parts) / jnp.float32(x_hat_S.size)
    loss_output = hyperprior_lambda * mse_out * (255.0 ** 2) * alpha
    loss_output = jnp.where(
        jnp.isnan(loss_output) | jnp.isinf(loss_output), 0.0, loss_output)

    mse_feat = jnp.sum(feat_parts) / jnp.float32(N * Ct * H * W)
    loss_feature = (hyperprior_lambda * mse_feat * (255.0 ** 2)
                    * beta * mgd_alpha)
    loss_feature = jnp.where(
        jnp.isnan(loss_feature) | jnp.isinf(loss_feature), 0.0, loss_feature)

    loss_latent = jnp.float32(0.0)
    return {"total_distill": loss_output + loss_feature,
            "L_output": loss_output,
            "L_feature": loss_feature,
            "L_latent": loss_latent}


def prepare_params(raw):
    """PyTorch conv layouts -> kernel layouts.

    align Conv1x1 (Ct, Cs, 1, 1) -> (Ct, Cs)
    gen   Conv3x3 (Ct, Ct, 3, 3) -> (Ct, 9*Ct), column index = (u*3+v)*Ct + ci
          (tap-major / channel-minor), matching the kernel's im2col rows.
    biases (Ct,) -> (Ct, 1) for lane broadcast.
    """
    Ct = raw["w_align"].shape[0]
    to2d = lambda w: jnp.transpose(w, (0, 2, 3, 1)).reshape(Ct, 9 * Ct)
    return {
        "wa": raw["w_align"].reshape(Ct, -1),
        "ba": raw["b_align"].reshape(Ct, 1),
        "w1": to2d(raw["w_gen1"]), "b1": raw["b_gen1"].reshape(Ct, 1),
        "w2": to2d(raw["w_gen2"]), "b2": raw["b_gen2"].reshape(Ct, 1),
    }


def _reference_loss(preds_S, preds_T, x_hat_S, x_hat_T, raw, mask,
                    hyperprior_lambda, alpha=0.5, beta=0.5, mgd_alpha=0.0003):
    """Pure JAX/XLA reference of the same forward pass (for the sanity check)."""
    dn = ("NCHW", "OIHW", "NCHW")
    conv = functools.partial(lax.conv_general_dilated, window_strides=(1, 1),
                             dimension_numbers=dn,
                             precision=lax.Precision.HIGHEST)
    mse = lambda a, b: jnp.mean((a - b) ** 2)
    loss_output = hyperprior_lambda * mse(x_hat_S, x_hat_T) * 255.0 ** 2 * alpha
    aligned = conv(preds_S, raw["w_align"], padding="VALID") \
        + raw["b_align"].reshape(1, -1, 1, 1)
    masked = aligned * mask.reshape(mask.shape[0], -1, 1, 1)
    h = conv(masked, raw["w_gen1"], padding=((1, 1), (1, 1))) \
        + raw["b_gen1"].reshape(1, -1, 1, 1)
    h = jnp.maximum(h, 0.0)
    new_fea = conv(h, raw["w_gen2"], padding=((1, 1), (1, 1))) \
        + raw["b_gen2"].reshape(1, -1, 1, 1)
    loss_feature = (hyperprior_lambda * mse(new_fea, preds_T) * 255.0 ** 2
                    * beta * mgd_alpha)
    return {"total_distill": loss_output + loss_feature,
            "L_output": loss_output, "L_feature": loss_feature}


def _run_case(key, N):
    Cs, Ct, H, W = 4, 8, 16, 16            # H*W = 256 -> lane-dense
    ks = jax.random.split(key, 11)

    # NCHW inputs, matching the PyTorch module's conventions.
    preds_S = jax.random.normal(ks[0], (N, Cs, H, W), jnp.float32)
    preds_T = jax.random.normal(ks[1], (N, Ct, H, W), jnp.float32)
    x_hat_S = jax.random.uniform(ks[2], (N, 3, H, W), jnp.float32)
    x_hat_T = jax.random.uniform(ks[3], (N, 3, H, W), jnp.float32)

    # Parameters in PyTorch layouts (Conv2d weight: (Cout, Cin, kH, kW)).
    raw = {
        "w_align": 0.1 * jax.random.normal(ks[4], (Ct, Cs, 1, 1), jnp.float32),
        "b_align": 0.1 * jax.random.normal(ks[5], (Ct,), jnp.float32),
        "w_gen1": 0.1 * jax.random.normal(ks[6], (Ct, Ct, 3, 3), jnp.float32),
        "b_gen1": 0.1 * jax.random.normal(ks[7], (Ct,), jnp.float32),
        "w_gen2": 0.1 * jax.random.normal(ks[8], (Ct, Ct, 3, 3), jnp.float32),
        "b_gen2": 0.1 * jax.random.normal(ks[9], (Ct,), jnp.float32),
    }
    params = prepare_params(raw)

    # MGD channel mask == (torch.rand((N, C, 1, 1)) < mgd_lambda ? 0 : 1).
    # TODO(synk): in-forward torch.rand RNG is replaced by a deterministic
    # jax.random key; the mask is supplied to the kernel as an input.
    mgd_lambda = 0.5
    u = jax.random.uniform(ks[10], (N, Ct), jnp.float32)
    mask = jnp.where(u < mgd_lambda, 0.0, 1.0).astype(jnp.float32)

    hyperprior_lambda = 0.01               # stand-in for cfg.hyperprior_lambda

    out = jax.jit(distillation_loss)(preds_S, preds_T, x_hat_S, x_hat_T,
                                     params, mask, hyperprior_lambda)
    out = jax.tree_util.tree_map(jax.block_until_ready, out)

    ref = _reference_loss(preds_S, preds_T, x_hat_S, x_hat_T, raw, mask,
                          hyperprior_lambda)
    # f32-accumulated results; 2e-3 relative (25x tighter than before) catches
    # any tap/weight-layout transposition while tolerating the MXU's f32 pass
    # mode differing slightly from XLA's HIGHEST-precision reference.
    for name in ("total_distill", "L_output", "L_feature"):
        got, want = float(out[name]), float(ref[name])
        assert abs(got - want) <= 2e-3 * abs(want) + 1e-6, (N, name, got, want)


if __name__ == "__main__":
    k1, k2 = jax.random.split(jax.random.PRNGKey(0))
    _run_case(k1, N=2)   # 2 parallel grid steps, 1 image each
    _run_case(k2, N=4)   # 2 parallel grid steps, 2 images per step
    print("KERNEL_OK")
</pallas_src>

<mosaic_0001>
module attributes {stable_mosaic.version = 11 : i64} {
  func.func @kernel(%arg0: i32, %arg1: memref<1x4x256xf32, #tpu.memory_space<vmem>>, %arg2: memref<1x8x256xf32, #tpu.memory_space<vmem>>, %arg3: memref<1x3x256xf32, #tpu.memory_space<vmem>>, %arg4: memref<1x3x256xf32, #tpu.memory_space<vmem>>, %arg5: memref<1x8x1xf32, #tpu.memory_space<vmem>>, %arg6: memref<9x256xf32, #tpu.memory_space<vmem>>, %arg7: memref<8x4xf32, #tpu.memory_space<vmem>>, %arg8: memref<8x1xf32, #tpu.memory_space<vmem>>, %arg9: memref<8x72xf32, #tpu.memory_space<vmem>>, %arg10: memref<8x1xf32, #tpu.memory_space<vmem>>, %arg11: memref<8x72xf32, #tpu.memory_space<vmem>>, %arg12: memref<8x1xf32, #tpu.memory_space<vmem>>, %arg13: memref<1x8x128xf32, #tpu.memory_space<vmem>>, %arg14: memref<1x8x128xf32, #tpu.memory_space<vmem>>) attributes {dimension_semantics = [#tpu.dimension_semantics<parallel>], iteration_bounds = array<i64: 2>, scalar_prefetch = 0 : i64, scratch_operands = 0 : i64, tpu.core_type = #tpu.core_type<tc>, window_params = [{transform_indices = @transform_0, window_bounds = array<i64: 1, 4, 256>}, {transform_indices = @transform_1, window_bounds = array<i64: 1, 8, 256>}, {transform_indices = @transform_2, window_bounds = array<i64: 1, 3, 256>}, {transform_indices = @transform_3, window_bounds = array<i64: 1, 3, 256>}, {transform_indices = @transform_4, window_bounds = array<i64: 1, 8, 1>}, {pipeline_mode = #tpu.pipeline_mode<synchronous>, transform_indices = @transform_5, window_bounds = array<i64: 9, 256>}, {pipeline_mode = #tpu.pipeline_mode<synchronous>, transform_indices = @transform_6, window_bounds = array<i64: 8, 4>}, {pipeline_mode = #tpu.pipeline_mode<synchronous>, transform_indices = @transform_7, window_bounds = array<i64: 8, 1>}, {pipeline_mode = #tpu.pipeline_mode<synchronous>, transform_indices = @transform_8, window_bounds = array<i64: 8, 72>}, {pipeline_mode = #tpu.pipeline_mode<synchronous>, transform_indices = @transform_9, window_bounds = array<i64: 8, 1>}, {pipeline_mode = #tpu.pipeline_mode<synchronous>, transform_indices = @transform_10, window_bounds = array<i64: 8, 72>}, {pipeline_mode = #tpu.pipeline_mode<synchronous>, transform_indices = @transform_11, window_bounds = array<i64: 8, 1>}, {transform_indices = @transform_12, window_bounds = array<i64: 1, 8, 128>}, {transform_indices = @transform_13, window_bounds = array<i64: 1, 8, 128>}]} {
    %c0 = arith.constant 0 : index
    %c0_0 = arith.constant 0 : index
    %0 = vector.load %arg7[%c0, %c0_0] : memref<8x4xf32, #tpu.memory_space<vmem>>, vector<8x4xf32>
    %c0_1 = arith.constant 0 : index
    %c0_2 = arith.constant 0 : index
    %1 = vector.load %arg8[%c0_1, %c0_2] : memref<8x1xf32, #tpu.memory_space<vmem>>, vector<8x1xf32>
    %c0_3 = arith.constant 0 : index
    %c0_4 = arith.constant 0 : index
    %2 = vector.load %arg9[%c0_3, %c0_4] : memref<8x72xf32, #tpu.memory_space<vmem>>, vector<8x72xf32>
    %c0_5 = arith.constant 0 : index
    %c0_6 = arith.constant 0 : index
    %3 = vector.load %arg10[%c0_5, %c0_6] : memref<8x1xf32, #tpu.memory_space<vmem>>, vector<8x1xf32>
    %c0_7 = arith.constant 0 : index
    %c0_8 = arith.constant 0 : index
    %4 = vector.load %arg11[%c0_7, %c0_8] : memref<8x72xf32, #tpu.memory_space<vmem>>, vector<8x72xf32>
    %c0_9 = arith.constant 0 : index
    %c0_10 = arith.constant 0 : index
    %5 = vector.load %arg12[%c0_9, %c0_10] : memref<8x1xf32, #tpu.memory_space<vmem>>, vector<8x1xf32>
    %c0_11 = arith.constant 0 : index
    %c0_12 = arith.constant 0 : index
    %6 = vector.load %arg6[%c0_11, %c0_12] : memref<9x256xf32, #tpu.memory_space<vmem>>, vector<9x256xf32>
    %c0_13 = arith.constant 0 : index
    %c0_14 = arith.constant 0 : index
    %c0_15 = arith.constant 0 : index
    %7 = vector.load %arg1[%c0_13, %c0_14, %c0_15] : memref<1x4x256xf32, #tpu.memory_space<vmem>>, vector<1x4x256xf32>
    %8 = vector.shape_cast %7 : vector<1x4x256xf32> to vector<4x256xf32>
    %cst = arith.constant dense<0.000000e+00> : vector<8x256xf32>
    %9 = tpu.matmul %0, %8, %cst {dimension_numbers = #tpu.dot_dimension_numbers<[1], [0], [0], [1], [0, 0, 1, 1], [], []>} : vector<8x4xf32>, vector<4x256xf32>, vector<8x256xf32> -> vector<8x256xf32>
    %10 = vector.broadcast %1 : vector<8x1xf32> to vector<8x256xf32>
    %11 = arith.addf %9, %10 : vector<8x256xf32>
    %c0_16 = arith.constant 0 : index
    %c0_17 = arith.constant 0 : index
    %c0_18 = arith.constant 0 : index
    %12 = vector.load %arg5[%c0_16, %c0_17, %c0_18] : memref<1x8x1xf32, #tpu.memory_space<vmem>>, vector<1x8x1xf32>
    %13 = vector.shape_cast %12 : vector<1x8x1xf32> to vector<8x1xf32>
    %14 = vector.broadcast %13 : vector<8x1xf32> to vector<8x256xf32>
    %15 = arith.mulf %11, %14 : vector<8x256xf32>
    %c17_i32 = arith.constant 17 : i32
    %16 = tpu.dynamic_rotate %15 by %c17_i32 dim 1 : vector<8x256xf32>, i32 -> vector<8x256xf32>
    %17 = vector.extract_strided_slice %6 {offsets = [0, 0], sizes = [1, 256], strides = [1, 1]} : vector<9x256xf32> to vector<1x256xf32>
    %18 = vector.broadcast %17 : vector<1x256xf32> to vector<8x256xf32>
    %19 = arith.mulf %16, %18 : vector<8x256xf32>
    %c16_i32 = arith.constant 16 : i32
    %20 = tpu.dynamic_rotate %15 by %c16_i32 dim 1 : vector<8x256xf32>, i32 -> vector<8x256xf32>
    %21 = vector.extract_strided_slice %6 {offsets = [1, 0], sizes = [1, 256], strides = [1, 1]} : vector<9x256xf32> to vector<1x256xf32>
    %22 = vector.broadcast %21 : vector<1x256xf32> to vector<8x256xf32>
    %23 = arith.mulf %20, %22 : vector<8x256xf32>
    %c15_i32 = arith.constant 15 : i32
    %24 = tpu.dynamic_rotate %15 by %c15_i32 dim 1 : vector<8x256xf32>, i32 -> vector<8x256xf32>
    %25 = vector.extract_strided_slice %6 {offsets = [2, 0], sizes = [1, 256], strides = [1, 1]} : vector<9x256xf32> to vector<1x256xf32>
    %26 = vector.broadcast %25 : vector<1x256xf32> to vector<8x256xf32>
    %27 = arith.mulf %24, %26 : vector<8x256xf32>
    %28 = tpu.concatenate %19, %23, %27 in 0 : vector<8x256xf32>, vector<8x256xf32>, vector<8x256xf32> -> vector<24x256xf32>
    %29 = vector.extract_strided_slice %2 {offsets = [0, 0], sizes = [8, 24], strides = [1, 1]} : vector<8x72xf32> to vector<8x24xf32>
    %cst_19 = arith.constant dense<0.000000e+00> : vector<8x256xf32>
    %30 = tpu.matmul %29, %28, %cst_19 {dimension_numbers = #tpu.dot_dimension_numbers<[1], [0], [0], [1], [0, 0, 1, 1], [], []>} : vector<8x24xf32>, vector<24x256xf32>, vector<8x256xf32> -> vector<8x256xf32>
    %c1_i32 = arith.constant 1 : i32
    %31 = tpu.dynamic_rotate %15 by %c1_i32 dim 1 : vector<8x256xf32>, i32 -> vector<8x256xf32>
    %32 = vector.extract_strided_slice %6 {offsets = [3, 0], sizes = [1, 256], strides = [1, 1]} : vector<9x256xf32> to vector<1x256xf32>
    %33 = vector.broadcast %32 : vector<1x256xf32> to vector<8x256xf32>
    %34 = arith.mulf %31, %33 : vector<8x256xf32>
    %c255_i32 = arith.constant 255 : i32
    %35 = tpu.dynamic_rotate %15 by %c255_i32 dim 1 : vector<8x256xf32>, i32 -> vector<8x256xf32>
    %36 = vector.extract_strided_slice %6 {offsets = [5, 0], sizes = [1, 256], strides = [1, 1]} : vector<9x256xf32> to vector<1x256xf32>
    %37 = vector.broadcast %36 : vector<1x256xf32> to vector<8x256xf32>
    %38 = arith.mulf %35, %37 : vector<8x256xf32>
    %39 = tpu.concatenate %34, %15, %38 in 0 : vector<8x256xf32>, vector<8x256xf32>, vector<8x256xf32> -> vector<24x256xf32>
    %40 = vector.extract_strided_slice %2 {offsets = [0, 24], sizes = [8, 24], strides = [1, 1]} : vector<8x72xf32> to vector<8x24xf32>
    %cst_20 = arith.constant dense<0.000000e+00> : vector<8x256xf32>
    %41 = tpu.matmul %40, %39, %cst_20 {dimension_numbers = #tpu.dot_dimension_numbers<[1], [0], [0], [1], [0, 0, 1, 1], [], []>} : vector<8x24xf32>, vector<24x256xf32>, vector<8x256xf32> -> vector<8x256xf32>
    %42 = arith.addf %30, %41 : vector<8x256xf32>
    %c241_i32 = arith.constant 241 : i32
    %43 = tpu.dynamic_rotate %15 by %c241_i32 dim 1 : vector<8x256xf32>, i32 -> vector<8x256xf32>
    %44 = vector.extract_strided_slice %6 {offsets = [6, 0], sizes = [1, 256], strides = [1, 1]} : vector<9x256xf32> to vector<1x256xf32>
    %45 = vector.broadcast %44 : vector<1x256xf32> to vector<8x256xf32>
    %46 = arith.mulf %43, %45 : vector<8x256xf32>
    %c240_i32 = arith.constant 240 : i32
    %47 = tpu.dynamic_rotate %15 by %c240_i32 dim 1 : vector<8x256xf32>, i32 -> vector<8x256xf32>
    %48 = vector.extract_strided_slice %6 {offsets = [7, 0], sizes = [1, 256], strides = [1, 1]} : vector<9x256xf32> to vector<1x256xf32>
    %49 = vector.broadcast %48 : vector<1x256xf32> to vector<8x256xf32>
    %50 = arith.mulf %47, %49 : vector<8x256xf32>
    %c239_i32 = arith.constant 239 : i32
    %51 = tpu.dynamic_rotate %15 by %c239_i32 dim 1 : vector<8x256xf32>, i32 -> vector<8x256xf32>
    %52 = vector.extract_strided_slice %6 {offsets = [8, 0], sizes = [1, 256], strides = [1, 1]} : vector<9x256xf32> to vector<1x256xf32>
    %53 = vector.broadcast %52 : vector<1x256xf32> to vector<8x256xf32>
    %54 = arith.mulf %51, %53 : vector<8x256xf32>
    %55 = tpu.concatenate %46, %50, %54 in 0 : vector<8x256xf32>, vector<8x256xf32>, vector<8x256xf32> -> vector<24x256xf32>
    %56 = vector.extract_strided_slice %2 {offsets = [0, 48], sizes = [8, 24], strides = [1, 1]} : vector<8x72xf32> to vector<8x24xf32>
    %cst_21 = arith.constant dense<0.000000e+00> : vector<8x256xf32>
    %57 = tpu.matmul %56, %55, %cst_21 {dimension_numbers = #tpu.dot_dimension_numbers<[1], [0], [0], [1], [0, 0, 1, 1], [], []>} : vector<8x24xf32>, vector<24x256xf32>, vector<8x256xf32> -> vector<8x256xf32>
    %58 = arith.addf %42, %57 : vector<8x256xf32>
    %59 = vector.broadcast %3 : vector<8x1xf32> to vector<8x256xf32>
    %60 = arith.addf %58, %59 : vector<8x256xf32>
    %cst_22 = arith.constant 0.000000e+00 : f32
    %61 = vector.broadcast %cst_22 : f32 to vector<8x256xf32>
    %62 = arith.maximumf %60, %61 : vector<8x256xf32>
    %c17_i32_23 = arith.constant 17 : i32
    %63 = tpu.dynamic_rotate %62 by %c17_i32_23 dim 1 : vector<8x256xf32>, i32 -> vector<8x256xf32>
    %64 = vector.extract_strided_slice %6 {offsets = [0, 0], sizes = [1, 256], strides = [1, 1]} : vector<9x256xf32> to vector<1x256xf32>
    %65 = vector.broadcast %64 : vector<1x256xf32> to vector<8x256xf32>
    %66 = arith.mulf %63, %65 : vector<8x256xf32>
    %c16_i32_24 = arith.constant 16 : i32
    %67 = tpu.dynamic_rotate %62 by %c16_i32_24 dim 1 : vector<8x256xf32>, i32 -> vector<8x256xf32>
    %68 = vector.extract_strided_slice %6 {offsets = [1, 0], sizes = [1, 256], strides = [1, 1]} : vector<9x256xf32> to vector<1x256xf32>
    %69 = vector.broadcast %68 : vector<1x256xf32> to vector<8x256xf32>
    %70 = arith.mulf %67, %69 : vector<8x256xf32>
    %c15_i32_25 = arith.constant 15 : i32
    %71 = tpu.dynamic_rotate %62 by %c15_i32_25 dim 1 : vector<8x256xf32>, i32 -> vector<8x256xf32>
    %72 = vector.extract_strided_slice %6 {offsets = [2, 0], sizes = [1, 256], strides = [1, 1]} : vector<9x256xf32> to vector<1x256xf32>
    %73 = vector.broadcast %72 : vector<1x256xf32> to vector<8x256xf32>
    %74 = arith.mulf %71, %73 : vector<8x256xf32>
    %75 = tpu.concatenate %66, %70, %74 in 0 : vector<8x256xf32>, vector<8x256xf32>, vector<8x256xf32> -> vector<24x256xf32>
    %76 = vector.extract_strided_slice %4 {offsets = [0, 0], sizes = [8, 24], strides = [1, 1]} : vector<8x72xf32> to vector<8x24xf32>
    %cst_26 = arith.constant dense<0.000000e+00> : vector<8x256xf32>
    %77 = tpu.matmul %76, %75, %cst_26 {dimension_numbers = #tpu.dot_dimension_numbers<[1], [0], [0], [1], [0, 0, 1, 1], [], []>} : vector<8x24xf32>, vector<24x256xf32>, vector<8x256xf32> -> vector<8x256xf32>
    %c1_i32_27 = arith.constant 1 : i32
    %78 = tpu.dynamic_rotate %62 by %c1_i32_27 dim 1 : vector<8x256xf32>, i32 -> vector<8x256xf32>
    %79 = vector.extract_strided_slice %6 {offsets = [3, 0], sizes = [1, 256], strides = [1, 1]} : vector<9x256xf32> to vector<1x256xf32>
    %80 = vector.broadcast %79 : vector<1x256xf32> to vector<8x256xf32>
    %81 = arith.mulf %78, %80 : vector<8x256xf32>
    %c255_i32_28 = arith.constant 255 : i32
    %82 = tpu.dynamic_rotate %62 by %c255_i32_28 dim 1 : vector<8x256xf32>, i32 -> vector<8x256xf32>
    %83 = vector.extract_strided_slice %6 {offsets = [5, 0], sizes = [1, 256], strides = [1, 1]} : vector<9x256xf32> to vector<1x256xf32>
    %84 = vector.broadcast %83 : vector<1x256xf32> to vector<8x256xf32>
    %85 = arith.mulf %82, %84 : vector<8x256xf32>
    %86 = tpu.concatenate %81, %62, %85 in 0 : vector<8x256xf32>, vector<8x256xf32>, vector<8x256xf32> -> vector<24x256xf32>
    %87 = vector.extract_strided_slice %4 {offsets = [0, 24], sizes = [8, 24], strides = [1, 1]} : vector<8x72xf32> to vector<8x24xf32>
    %cst_29 = arith.constant dense<0.000000e+00> : vector<8x256xf32>
    %88 = tpu.matmul %87, %86, %cst_29 {dimension_numbers = #tpu.dot_dimension_numbers<[1], [0], [0], [1], [0, 0, 1, 1], [], []>} : vector<8x24xf32>, vector<24x256xf32>, vector<8x256xf32> -> vector<8x256xf32>
    %89 = arith.addf %77, %88 : vector<8x256xf32>
    %c241_i32_30 = arith.constant 241 : i32
    %90 = tpu.dynamic_rotate %62 by %c241_i32_30 dim 1 : vector<8x256xf32>, i32 -> vector<8x256xf32>
    %91 = vector.extract_strided_slice %6 {offsets = [6, 0], sizes = [1, 256], strides = [1, 1]} : vector<9x256xf32> to vector<1x256xf32>
    %92 = vector.broadcast %91 : vector<1x256xf32> to vector<8x256xf32>
    %93 = arith.mulf %90, %92 : vector<8x256xf32>
    %c240_i32_31 = arith.constant 240 : i32
    %94 = tpu.dynamic_rotate %62 by %c240_i32_31 dim 1 : vector<8x256xf32>, i32 -> vector<8x256xf32>
    %95 = vector.extract_strided_slice %6 {offsets = [7, 0], sizes = [1, 256], strides = [1, 1]} : vector<9x256xf32> to vector<1x256xf32>
    %96 = vector.broadcast %95 : vector<1x256xf32> to vector<8x256xf32>
    %97 = arith.mulf %94, %96 : vector<8x256xf32>
    %c239_i32_32 = arith.constant 239 : i32
    %98 = tpu.dynamic_rotate %62 by %c239_i32_32 dim 1 : vector<8x256xf32>, i32 -> vector<8x256xf32>
    %99 = vector.extract_strided_slice %6 {offsets = [8, 0], sizes = [1, 256], strides = [1, 1]} : vector<9x256xf32> to vector<1x256xf32>
    %100 = vector.broadcast %99 : vector<1x256xf32> to vector<8x256xf32>
    %101 = arith.mulf %98, %100 : vector<8x256xf32>
    %102 = tpu.concatenate %93, %97, %101 in 0 : vector<8x256xf32>, vector<8x256xf32>, vector<8x256xf32> -> vector<24x256xf32>
    %103 = vector.extract_strided_slice %4 {offsets = [0, 48], sizes = [8, 24], strides = [1, 1]} : vector<8x72xf32> to vector<8x24xf32>
    %cst_33 = arith.constant dense<0.000000e+00> : vector<8x256xf32>
    %104 = tpu.matmul %103, %102, %cst_33 {dimension_numbers = #tpu.dot_dimension_numbers<[1], [0], [0], [1], [0, 0, 1, 1], [], []>} : vector<8x24xf32>, vector<24x256xf32>, vector<8x256xf32> -> vector<8x256xf32>
    %105 = arith.addf %89, %104 : vector<8x256xf32>
    %106 = vector.broadcast %5 : vector<8x1xf32> to vector<8x256xf32>
    %107 = arith.addf %105, %106 : vector<8x256xf32>
    %c0_34 = arith.constant 0 : index
    %c0_35 = arith.constant 0 : index
    %c0_36 = arith.constant 0 : index
    %108 = vector.load %arg2[%c0_34, %c0_35, %c0_36] : memref<1x8x256xf32, #tpu.memory_space<vmem>>, vector<1x8x256xf32>
    %109 = vector.shape_cast %108 : vector<1x8x256xf32> to vector<8x256xf32>
    %110 = arith.subf %107, %109 : vector<8x256xf32>
    %111 = arith.mulf %110, %110 : vector<8x256xf32>
    %112 = vector.shape_cast %111 : vector<8x256xf32> to vector<1x8x256xf32>
    %cst_37 = arith.constant dense<0.000000e+00> : vector<1xf32>
    %113 = vector.multi_reduction <add>, %112, %cst_37 [1, 2] : vector<1x8x256xf32> to vector<1xf32>
    %114 = vector.shape_cast %113 : vector<1xf32> to vector<1x1x1xf32>
    %115 = vector.extract %114[0, 0, 0] : f32 from vector<1x1x1xf32>
    %cst_38 = arith.constant 0.000000e+00 : f32
    %116 = arith.addf %cst_38, %115 : f32
    %c0_39 = arith.constant 0 : index
    %c0_40 = arith.constant 0 : index
    %c0_41 = arith.constant 0 : index
    %117 = vector.load %arg3[%c0_39, %c0_40, %c0_41] : memref<1x3x256xf32, #tpu.memory_space<vmem>>, vector<1x3x256xf32>
    %118 = vector.shape_cast %117 : vector<1x3x256xf32> to vector<3x256xf32>
    %c0_42 = arith.constant 0 : index
    %c0_43 = arith.constant 0 : index
    %c0_44 = arith.constant 0 : index
    %119 = vector.load %arg4[%c0_42, %c0_43, %c0_44] : memref<1x3x256xf32, #tpu.memory_space<vmem>>, vector<1x3x256xf32>
    %120 = vector.shape_cast %119 : vector<1x3x256xf32> to vector<3x256xf32>
    %121 = arith.subf %118, %120 : vector<3x256xf32>
    %122 = arith.mulf %121, %121 : vector<3x256xf32>
    %123 = vector.shape_cast %122 : vector<3x256xf32> to vector<1x3x256xf32>
    %cst_45 = arith.constant dense<0.000000e+00> : vector<1xf32>
    %124 = vector.multi_reduction <add>, %123, %cst_45 [1, 2] : vector<1x3x256xf32> to vector<1xf32>
    %125 = vector.shape_cast %124 : vector<1xf32> to vector<1x1x1xf32>
    %126 = vector.extract %125[0, 0, 0] : f32 from vector<1x1x1xf32>
    %cst_46 = arith.constant 0.000000e+00 : f32
    %127 = arith.addf %cst_46, %126 : f32
    %cst_47 = arith.constant 0.000000e+00 : f32
    %128 = vector.broadcast %cst_47 : f32 to vector<1x8x128xf32>
    %129 = vector.broadcast %116 : f32 to vector<1x8x128xf32>
    %130 = arith.addf %128, %129 : vector<1x8x128xf32>
    %c0_48 = arith.constant 0 : index
    %c0_49 = arith.constant 0 : index
    %c0_50 = arith.constant 0 : index
    %131 = vector.load %arg13[%c0_48, %c0_49, %c0_50] : memref<1x8x128xf32, #tpu.memory_space<vmem>>, vector<1x8x128xf32>
    tpu.vector_store %arg13[%c0_48, %c0_49, %c0_50], %130 {strides = array<i32>} : memref<1x8x128xf32, #tpu.memory_space<vmem>>, vector<1x8x128xf32>,
    %cst_51 = arith.constant 0.000000e+00 : f32
    %132 = vector.broadcast %cst_51 : f32 to vector<1x8x128xf32>
    %133 = vector.broadcast %127 : f32 to vector<1x8x128xf32>
    %134 = arith.addf %132, %133 : vector<1x8x128xf32>
    %c0_52 = arith.constant 0 : index
    %c0_53 = arith.constant 0 : index
    %c0_54 = arith.constant 0 : index
    %135 = vector.load %arg14[%c0_52, %c0_53, %c0_54] : memref<1x8x128xf32, #tpu.memory_space<vmem>>, vector<1x8x128xf32>
    tpu.vector_store %arg14[%c0_52, %c0_53, %c0_54], %134 {strides = array<i32>} : memref<1x8x128xf32, #tpu.memory_space<vmem>>, vector<1x8x128xf32>,
    return
  }
  func.func @transform_0(%arg0: i32) -> (i32, i32, i32) {
    %c0_i32 = arith.constant 0 : i32
    %c0_i32_0 = arith.constant 0 : i32
    %c0_i32_1 = arith.constant 0 : i32
    return %arg0, %c0_i32, %c0_i32_0 : i32, i32, i32
  }
  func.func @transform_1(%arg0: i32) -> (i32, i32, i32) {
    %c0_i32 = arith.constant 0 : i32
    %c0_i32_0 = arith.constant 0 : i32
    %c0_i32_1 = arith.constant 0 : i32
    return %arg0, %c0_i32, %c0_i32_0 : i32, i32, i32
  }
  func.func @transform_2(%arg0: i32) -> (i32, i32, i32) {
    %c0_i32 = arith.constant 0 : i32
    %c0_i32_0 = arith.constant 0 : i32
    %c0_i32_1 = arith.constant 0 : i32
    return %arg0, %c0_i32, %c0_i32_0 : i32, i32, i32
  }
  func.func @transform_3(%arg0: i32) -> (i32, i32, i32) {
    %c0_i32 = arith.constant 0 : i32
    %c0_i32_0 = arith.constant 0 : i32
    %c0_i32_1 = arith.constant 0 : i32
    return %arg0, %c0_i32, %c0_i32_0 : i32, i32, i32
  }
  func.func @transform_4(%arg0: i32) -> (i32, i32, i32) {
    %c0_i32 = arith.constant 0 : i32
    %c0_i32_0 = arith.constant 0 : i32
    %c0_i32_1 = arith.constant 0 : i32
    return %arg0, %c0_i32, %c0_i32_0 : i32, i32, i32
  }
  func.func @transform_5(%arg0: i32) -> (i32, i32) {
    %c0_i32 = arith.constant 0 : i32
    %c0_i32_0 = arith.constant 0 : i32
    %c0_i32_1 = arith.constant 0 : i32
    return %c0_i32, %c0_i32_0 : i32, i32
  }
  func.func @transform_6(%arg0: i32) -> (i32, i32) {
    %c0_i32 = arith.constant 0 : i32
    %c0_i32_0 = arith.constant 0 : i32
    %c0_i32_1 = arith.constant 0 : i32
    return %c0_i32, %c0_i32_0 : i32, i32
  }
  func.func @transform_7(%arg0: i32) -> (i32, i32) {
    %c0_i32 = arith.constant 0 : i32
    %c0_i32_0 = arith.constant 0 : i32
    %c0_i32_1 = arith.constant 0 : i32
    return %c0_i32, %c0_i32_0 : i32, i32
  }
  func.func @transform_8(%arg0: i32) -> (i32, i32) {
    %c0_i32 = arith.constant 0 : i32
    %c0_i32_0 = arith.constant 0 : i32
    %c0_i32_1 = arith.constant 0 : i32
    return %c0_i32, %c0_i32_0 : i32, i32
  }
  func.func @transform_9(%arg0: i32) -> (i32, i32) {
    %c0_i32 = arith.constant 0 : i32
    %c0_i32_0 = arith.constant 0 : i32
    %c0_i32_1 = arith.constant 0 : i32
    return %c0_i32, %c0_i32_0 : i32, i32
  }
  func.func @transform_10(%arg0: i32) -> (i32, i32) {
    %c0_i32 = arith.constant 0 : i32
    %c0_i32_0 = arith.constant 0 : i32
    %c0_i32_1 = arith.constant 0 : i32
    return %c0_i32, %c0_i32_0 : i32, i32
  }
  func.func @transform_11(%arg0: i32) -> (i32, i32) {
    %c0_i32 = arith.constant 0 : i32
    %c0_i32_0 = arith.constant 0 : i32
    %c0_i32_1 = arith.constant 0 : i32
    return %c0_i32, %c0_i32_0 : i32, i32
  }
  func.func @transform_12(%arg0: i32) -> (i32, i32, i32) {
    %c0_i32 = arith.constant 0 : i32
    %c0_i32_0 = arith.constant 0 : i32
    %c0_i32_1 = arith.constant 0 : i32
    return %arg0, %c0_i32, %c0_i32_0 : i32, i32, i32
  }
  func.func @transform_13(%arg0: i32) -> (i32, i32, i32) {
    %c0_i32 = arith.constant 0 : i32
    %c0_i32_0 = arith.constant 0 : i32
    %c0_i32_1 = arith.constant 0 : i32
    return %arg0, %c0_i32, %c0_i32_0 : i32, i32, i32
  }
}

</mosaic_0001>

<bundles_post_ra>
// kernel: distillation_loss.1
= control target key start
LH: loop header
LB: loop body
LE: loop exit
PB: predicated region body
PF: predicated region fallthrough
CT: control target
= control target key end

     0   :  { %s1662_s25 = smov 0   ;;  %s1975_s0 = inlined_call_operand.vmem [shape: f32[2,4,256], index: 0, kind: input, shape index: {}]   ;;  %s1976_s1 = inlined_call_operand.vmem [shape: f32[2,8,256], index: 1, kind: input, shape index: {}]   ;;  %s1977_s2 = inlined_call_operand.vmem [shape: f32[2,3,256], index: 2, kind: input, shape index: {}]   ;;  %s1978_s3 = inlined_call_operand.vmem [shape: f32[2,3,256], index: 3, kind: input, shape index: {}]   ;;  %s1979_s4 = inlined_call_operand.vmem [shape: f32[2,8,1], index: 4, kind: input, shape index: {}]   ;;  %s1980_s5 = inlined_call_operand.vmem [shape: f32[9,256], index: 5, kind: input, shape index: {}]   ;;  %s1981_s6 = inlined_call_operand.vmem [shape: f32[8,4], index: 6, kind: input, shape index: {}]   ;;  %s1982_s7 = inlined_call_operand.vmem [shape: f32[8,1], index: 7, kind: input, shape index: {}]   ;;  %s1983_s8 = inlined_call_operand.vmem [shape: f32[8,72], index: 8, kind: input, shape index: {}]   ;;  %s1984_s9 = inlined_call_operand.vmem [shape: f32[8,1], index: 9, kind: input, shape index: {}]   ;;  %s1985_s10 = inlined_call_operand.vmem [shape: f32[8,72], index: 10, kind: input, shape index: {}]   ;;  %s1986_s11 = inlined_call_operand.vmem [shape: f32[8,1], index: 11, kind: input, shape index: {}]   ;;  %s1987_s12 = inlined_call_operand.vmem [shape: f32[2,8,128], index: 12, kind: output, shape index: {0}]   ;;  %s1988_s13 = inlined_call_operand.vmem [shape: f32[2,8,128], index: 13, kind: output, shape index: {1}]  }
   0x1 LB: > { %s1480_s26 = sadd.s32 4294967295, %s1578_s25   ;;  %p1484_p0 = scmp.ge.s32.totalorder %s1578_s25, 1  ;;  %s1578_s25 = sphi %s1662_s25, %s24_s25  }
   0x2   : > { %p429_p1 = scmp.lt.s32.totalorder %s1578_s25, 3 }
   0x4   : > { %p430_p2 = pnand %p1484_p0, %p429_p1 }
   0x5   : > { %p495_p3 = scmp.lt.s32.totalorder (!%p430_p2), %s1480_s26, 1  ;;  %v1580_v0 = vmov (!%p430_p2), 0.0   ;;  %v1581_v1 = vmov (!%p430_p2), 0   ;;  %v528_v2 = vld [vmem:[%s1982_s7] sm:$0xff] (!%p430_p2)  ;;  %vm549_vm0 = vcmask (!%p430_p2), 1043456   ;;  %vm545_vm1 = vcmask (!%p430_p2), 31744  }
   0x6   : > { %433 = sbr.rel (%p430_p2) target bundleno = 1185 (0x4a1), region = 68  ;;  %618 = vmatprep.mubr.f32.mxu0 (!%p430_p2), %v1580_v0  ;;  %1569 = vset.pattern.permute.xlu0 (!%p430_p2), %v1581_v1  ;;  %v527_v6 = vld [vmem:[%s1981_s6] sm:$0xff] (!%p430_p2)  ;;  %s1582_s23 = smov (!%p430_p2), 104   ;;  %v637_v18 = vlaneseq (!%p430_p2)  ;;  %v1743_v25 = vld [vmem:[%s1980_s5 + $0x8] sm:$0xff] (!%p430_p2)  ;;  %vm723_vm5 = vcmask (!%p430_p2), 195584   ;;  %vm1328_vm11 = vcmask (!%p430_p2), 1042432  }
   0x7   : > { %540 = vperm.xlu0 (!%p430_p2), %1569, %v528_v2   ;;  %790 = vmatprep.mubr.f32.mxu1 (!%p430_p2), %v1580_v0  ;;  %v1695_v7 = vld [vmem:[%s1983_s8] sm:$0xff] (!%p430_p2)  ;;  %s1583_s24 = smov (!%p430_p2), 127   ;;  %s1584_s27 = smov (!%p430_p2), 1  }
   0x8   : > { %1570 = vset.pattern.permute.xlu1 (!%p430_p2), %v1581_v1  ;;  %s1585_s28 = smov (!%p430_p2), 17   ;;  %s1586_s30 = smov (!%p430_p2), 15   ;;  %v530_v16 = vld [vmem:[%s1984_s9] sm:$0xff] (!%p430_p2)  ;;  %v1730_v19 = vshrl.u32 (!%p430_p2), %v637_v18, 7  ;;  %v1732_v22 = vand.u32 (!%p430_p2), 127, %v637_v18 }
   0x9   : > { %s1587_s14 = smov (!%p430_p2), 16   ;;  %s1589_s16 = smov (!%p430_p2), 112   ;;  %v1738_v24 = vld [vmem:[%s1980_s5] sm:$0xff] (!%p430_p2) }
   0xa   : > { %s1590_s17 = smov (!%p430_p2), 111   ;;  %s1591_s20 = smov (!%p430_p2), 80   ;;  %v695_v23 = vsub.s32 (!%p430_p2), 3, %v1730_v19  ;;  %vm690_vm2 = vcmp.lt.s32.totalorder (!%p430_p2), %v1732_v22, 1  ;;  %v712_v29 = vsub.s32 (!%p430_p2), 5, %v1730_v19  ;;  %vm707_vm3 = vcmp.lt.s32.totalorder (!%p430_p2), %v1732_v22, 127 }
   0xb   : > { %v644_v43 = vsub.s32 (!%p430_p2), 0, %v1730_v19  ;;  %v661_v47 = vsub.s32 (!%p430_p2), 1, %v1730_v19  ;;  %v678_v48 = vsub.s32 (!%p430_p2), 2, %v1730_v19  ;;  %vm639_vm4 = vcmp.lt.s32.totalorder (!%p430_p2), %v1732_v22, 17 }
   0xc   : > { %v1749_v28 = vrot.slane (!%p430_p2), %v1738_v24, %v695_v23  ;;  %v1753_v30 = vrot.slane (!%p430_p2), %v1743_v25, %v695_v23  ;;  %v1762_v36 = vrot.slane (!%p430_p2), %v1743_v25, %v712_v29  ;;  %v1767_v41 = vrot.slane (!%p430_p2), %v1738_v24, %v712_v29 }
   0xd   : > { %s1990_s26 = smov (!%p495_p3, %s1480_s26), 1  ;;  %v1780_v51 = vrot.slane %v1738_v24, %v644_v43  ;;  %v1783_v52 = vrot.slane %v1743_v25, %v644_v43  ;;  %vm656_vm6 = vcmp.lt.s32.totalorder %v1732_v22, 16  ;;  %v1787_v53 = vrot.slane %v1738_v24, %v661_v47  ;;  %v1873_v43 = vld [vmem:[%s1985_s10] sm:$0xff] }
   0xe   : > { %s1678_s29 = sshll.u32 %s1990_s26, 3  ;;  %v1790_v54 = vrot.slane %v1743_v25, %v661_v47  ;;  %vm673_vm7 = vcmp.lt.s32.totalorder %v1732_v22, 15  ;;  %v1798_v57 = vrot.slane %v1743_v25, %v678_v48  ;;  %v879_v62 = vsub.s32 6, %v1730_v19 }
   0xf   : > { %s499_s15 = scalar_lea.vmem %s1975_s0, %s1678_s29  ;;  %s518_s18 = scalar_lea.vmem %s1979_s4, %s1678_s29  ;;  %v896_v63 = vsub.s32 7, %v1730_v19  ;;  %vm874_vm8 = vcmp.lt.s32.totalorder %v1732_v22, 113  ;;  %vm891_vm9 = vcmp.lt.s32.totalorder %v1732_v22, 112  ;;  %vm908_vm10 = vcmp.lt.s32.totalorder %v1732_v22, 111 }
  0x10   : > { %v537_v3 = vld [vmem:[%s499_s15] sm:$0xff]  ;;  %s1588_s15 = smov 113   ;;  %s522_s22 = scalar_lea.vmem %s1987_s12, %s1678_s29 }
  0x11   : > { %v625_v4 = vld [vmem:[%s518_s18] sm:$0xff]  ;;  %v544_v5 = vcombine.high %v537_v3, %v537_v3 }
  0x12   : > { %628 = vperm.xlu0 %1569, %v625_v4  }
  0x13   : > { %1496 = vmatprep.subr.msk.mxu0 %vm549_vm0, %v544_v5 }
  0x14   : > { %1497 = vmatpush1.msk.msra.mxu0 %vm549_vm0, %v537_v3 }
  0x15   : > { %1498 = vmatmul.mubr.msk.f32.vlgmr.msra.gmra.mrb[0].mxu0 %vm545_vm1, %v527_v6 }
  0x16   : > { %1116 = vmatprep.mubr.f32.mxu0 %v1580_v0  ;;  %721 = vrot.lane.b32.xlu0 %v1695_v7, %s1582_s23 }
  0x86   : > { %v541_v8 = vpop.permute.xlu0 %540 }
  0x91   : > { %v629_v12 = vpop.permute.xlu0 %628 }
  0x95   : > { %v722_v17 = vpop.permute.xlu0 %721 }
  0xe8   : > { %v620_v9 = vpop.f32.mrb[0].mxu0 }
  0xe9   : > { %v621_v10 = vadd.f32 %v620_v9, %v541_v8  ;;  %v622_v11 = vpop.f32.mrb[1].mxu0 }
  0xea   : > { %v623_v14 = vadd.f32 %v622_v11, %v541_v8  ;;  %v1820_v11 = vrot.slane %v1738_v24, %v879_v62 }
  0xeb   : > { %v1699_v13 = vmul.f32 %v629_v12, %v621_v10  ;;  %v1817_v10 = vrot.slane %v1738_v24, %v678_v48 }
  0xec   : > { %v632_v15 = vmul.f32 %v629_v12, %v623_v14  ;;  %v1823_v12 = vrot.slane %v1743_v25, %v879_v62 }
  0xed   : > { %703 = vrot.lane.b32.xlu0 %v1699_v13, %s1583_s24  ;;  %686 = vrot.lane.b32.xlu1 %v1699_v13, %s1584_s27 }
  0xf1   : > { %633 = vrot.lane.b32.xlu0 %v1699_v13, %s1585_s28  ;;  %669 = vrot.lane.b32.xlu1 %v1699_v13, %s1586_s30 }
  0xf5   : > { %652 = vrot.lane.b32.xlu0 %v1699_v13, %s1587_s14  ;;  %688 = vrot.lane.b32.xlu1 %v632_v15, %s1584_s27 }
  0xf9   : > { %671 = vrot.lane.b32.xlu0 %v632_v15, %s1586_s30  ;;  %705 = vrot.lane.b32.xlu1 %v632_v15, %s1583_s24 }
  0xfd   : > { %872 = vrot.lane.b32.xlu0 %v632_v15, %s1588_s15  ;;  %635 = vrot.lane.b32.xlu1 %v632_v15, %s1585_s28 }
 0x101   : > { %889 = vrot.lane.b32.xlu0 %v632_v15, %s1589_s16  ;;  %654 = vrot.lane.b32.xlu1 %v632_v15, %s1587_s14 }
 0x105   : > { %906 = vrot.lane.b32.xlu0 %v632_v15, %s1590_s17  ;;  %870 = vrot.lane.b32.xlu1 %v1699_v13, %s1588_s15 }
 0x109   : > { %1000 = vperm.xlu0 %1569, %v530_v16   ;;  %887 = vrot.lane.b32.xlu1 %v1699_v13, %s1589_s16  ;;  %v1831_v16 = vrot.slane %v1738_v24, %v896_v63 }
 0x10d   : > { %904 = vrot.lane.b32.xlu1 %v1699_v13, %s1590_s17 }
 0x111   : > { %921 = vrot.lane.b32.xlu1 %v1695_v7, %s1591_s20 }
 0x115   : > { %1048 = vrot.lane.b32.xlu1 %v1873_v43, %s1582_s23 }
 0x15f   : > { %v704_v20 = vpop.permute.xlu0 %703  ;;  %v687_v21 = vpop.permute.xlu1 %686 }
 0x163   : > { %v634_v26 = vpop.permute.xlu0 %633  ;;  %v1745_v27 = vpop.permute.xlu1 %669 }
 0x167   : > { %v653_v31 = vpop.permute.xlu0 %652  ;;  %v689_v32 = vpop.permute.xlu1 %688 }
 0x168   : > { %v691_v33 = vsel %vm690_vm2, %v687_v21, %v689_v32  ;;  %v692_v34 = vsel %vm690_vm2, %v689_v32, %v687_v21 }
 0x169   : > { %v701_v35 = vmul.f32 %v1749_v28, %v692_v34  ;;  %v702_v37 = vmul.f32 %v1753_v30, %v691_v33 }
 0x16b   : > { %v706_v38 = vpop.permute.xlu1 %705  ;;  %v1513_v39 = vpack.c.bf16 %v632_v15, %v702_v37  ;;  %v1515_v40 = vpack.c.bf16 %v1699_v13, %v701_v35  ;;  %v672_v44 = vpop.permute.xlu0 %671 }
 0x16c   : > { %v709_v42 = vsel %vm707_vm3, %v706_v38, %v704_v20  ;;  %v708_v45 = vsel %vm707_vm3, %v704_v20, %v706_v38  ;;  %v674_v5 = vsel %vm673_vm7, %v1745_v27, %v672_v44  ;;  %v675_v13 = vsel %vm673_vm7, %v672_v44, %v1745_v27  ;;  %v1863_v38 = vld [vmem:[%s1980_s5 + $0x10] ss:$0 sm:$0xff] }
 0x16d   : > { %v719_v46 = vmul.f32 %v1762_v36, %v709_v42  ;;  %1514 = vmatprep.subr.bf16.mxu1 %v1513_v39  ;;  %v718_v50 = vmul.f32 %v1767_v41, %v708_v45  ;;  %v685_v14 = vmul.f32 %v1798_v57, %v674_v5  ;;  %v684_v21 = vmul.f32 %v1817_v10, %v675_v13 }
 0x16e   : > { %1516 = vmatpush1.bf16.msra.mxu1 %v1515_v40 }
 0x16f   : > { %730 = vmatprep.subr.mxu1 %v719_v46  ;;  %v636_v49 = vpop.permute.xlu1 %635  ;;  %v873_v58 = vpop.permute.xlu0 %872 }
 0x170   : > { %v640_v55 = vsel %vm639_vm4, %v634_v26, %v636_v49  ;;  %v641_v56 = vsel %vm639_vm4, %v636_v49, %v634_v26 }
 0x171   : > { %v650_v1 = vmul.f32 %v1780_v51, %v641_v56  ;;  %v651_v2 = vmul.f32 %v1783_v52, %v640_v55  ;;  %v532_v55 = vld [vmem:[%s1986_s11] sm:$0xff] }
 0x172   : > { %731 = vmatpush1.msra.mxu1 %v718_v50 }
 0x173   : > { %1499 = vmatmul.mubr.msk.f32.vlgmr.msra.gmra.mrb[0].mxu1 %vm723_vm5, %v722_v17  ;;  %v655_v59 = vpop.permute.xlu1 %654  ;;  %v890_v15 = vpop.permute.xlu0 %889  ;;  %v1834_v17 = vrot.slane %v1743_v25, %v896_v63 }
 0x174   : > { %v657_v60 = vsel %vm656_vm6, %v653_v31, %v655_v59  ;;  %v658_v61 = vsel %vm656_vm6, %v655_v59, %v653_v31  ;;  %863 = vmatprep.mubr.f32.mxu1 %v1580_v0  ;;  %v1853_v31 = vld [vmem:[%s1980_s5 + $0x18] ss:$0 sm:$0xff] }
 0x175   : > { %v667_v3 = vmul.f32 %v1787_v53, %v658_v61  ;;  %v668_v4 = vmul.f32 %v1790_v54, %v657_v60 }
 0x177   : > { %v1519_v6 = vpack.c.bf16 %v667_v3, %v650_v1  ;;  %v871_v8 = vpop.permute.xlu1 %870  ;;  %v1517_v9 = vpack.c.bf16 %v668_v4, %v651_v2  ;;  %v907_v32 = vpop.permute.xlu0 %906 }
 0x178   : > { %v875_v18 = vsel %vm874_vm8, %v871_v8, %v873_v58  ;;  %v876_v19 = vsel %vm874_vm8, %v873_v58, %v871_v8 }
 0x179   : > { %1518 = vmatprep.subr.bf16.mxu1 %v1517_v9  ;;  %v885_v25 = vmul.f32 %v1820_v11, %v875_v18  ;;  %v886_v26 = vmul.f32 %v1823_v12, %v876_v19 }
 0x17a   : > { %1520 = vmatpush1.bf16.msra.mxu1 %v1519_v6 }
 0x17b   : > { %803 = vmatprep.subr.mxu1 %v685_v14  ;;  %v888_v20 = vpop.permute.xlu1 %887 }
 0x17c   : > { %v892_v23 = vsel %vm891_vm9, %v888_v20, %v890_v15  ;;  %v893_v24 = vsel %vm891_vm9, %v890_v15, %v888_v20 }
 0x17d   : > { %v902_v27 = vmul.f32 %v1831_v16, %v892_v23  ;;  %v903_v29 = vmul.f32 %v1834_v17, %v893_v24 }
 0x17e   : > { %804 = vmatpush1.msra.mxu1 %v684_v21 }
 0x17f   : > { %v1523_v33 = vpack.c.bf16 %v902_v27, %v885_v25  ;;  %1500 = vmatmul.mubr.msk.f32.vlgmr.msra.gmra.mrb[0].mxu1 %vm723_vm5, %v1695_v7  ;;  %v905_v34 = vpop.permute.xlu1 %904  ;;  %v1521_v35 = vpack.c.bf16 %v903_v29, %v886_v26 }
 0x180   : > { %v910_v37 = vsel %vm908_vm10, %v907_v32, %v905_v34  ;;  %989 = vmatprep.mubr.f32.mxu1 %v1580_v0  ;;  %v909_v39 = vsel %vm908_vm10, %v905_v34, %v907_v32 }
 0x181   : > { %v920_v40 = vmul.f32 %v1853_v31, %v910_v37  ;;  %1522 = vmatprep.subr.bf16.mxu1 %v1521_v35  ;;  %v919_v7 = vmul.f32 %v1863_v38, %v909_v39 }
 0x182   : > { %1524 = vmatpush1.bf16.msra.mxu1 %v1523_v33 }
 0x183   : > { %929 = vmatprep.subr.mxu1 %v920_v40  ;;  %v922_v42 = vpop.permute.xlu1 %921 }
 0x186   : > { %930 = vmatpush1.msra.mxu1 %v919_v7 }
 0x187   : > { %1503 = vmatmul.mubr.msk.f32.vlgmr.msra.gmra.mrb[0].mxu1 %vm723_vm5, %v922_v42  ;;  %v1049_v56 = vpop.permute.xlu1 %1048 }
 0x188   : > { %v1001_v44 = vpop.permute.xlu0 %1000 }
 0x25a   : > { %v991_v45 = vpop.f32.mrb[0].mxu1 }
 0x25b   : > { %v1003_v46 = vadd.f32 %v1001_v44, %v991_v45  ;;  %v993_v47 = vpop.f32.mrb[1].mxu1 }
 0x25c   : > { %v1004_v49 = vadd.f32 %v1001_v44, %v993_v47 }
 0x25d   : > { %v1005_v48 = vmax.f32 %v1003_v46, 0.0 }
 0x25e   : > { %v1006_v50 = vmax.f32 %v1004_v49, 0.0 }
 0x25f   : > { %1023 = vrot.lane.b32.xlu0 %v1005_v48, %s1586_s30  ;;  %1031 = vrot.lane.b32.xlu1 %v1005_v48, %s1584_s27 }
 0x263   : > { %1039 = vrot.lane.b32.xlu1 %v1005_v48, %s1583_s24  ;;  %1033 = vrot.lane.b32.xlu0 %v1006_v50, %s1584_s27 }
 0x267   : > { %1007 = vrot.lane.b32.xlu1 %v1005_v48, %s1585_s28  ;;  %1041 = vrot.lane.b32.xlu0 %v1006_v50, %s1583_s24 }
 0x26b   : > { %1015 = vrot.lane.b32.xlu1 %v1005_v48, %s1587_s14  ;;  %1009 = vrot.lane.b32.xlu0 %v1006_v50, %s1585_s28  ;;  %s526_s28 = scalar_lea.vmem %s1988_s13, %s1678_s29 }
 0x26f   : > { %1025 = vrot.lane.b32.xlu1 %v1006_v50, %s1586_s30  ;;  %1017 = vrot.lane.b32.xlu0 %v1006_v50, %s1587_s14  ;;  %s509_s30 = scalar_lea.vmem %s1977_s2, %s1678_s29 }
 0x273   : > { %1198 = vrot.lane.b32.xlu1 %v1006_v50, %s1588_s15  ;;  %1196 = vrot.lane.b32.xlu0 %v1005_v48, %s1588_s15 }
 0x277   : > { %1206 = vrot.lane.b32.xlu1 %v1006_v50, %s1589_s16  ;;  %1204 = vrot.lane.b32.xlu0 %v1005_v48, %s1589_s16  ;;  %s514_s16 = scalar_lea.vmem %s1978_s3, %s1678_s29 }
 0x278   : > { %v1322_v22 = vld [vmem:[%s514_s16] sm:$0x77] }
 0x27b   : > { %1214 = vrot.lane.b32.xlu1 %v1006_v50, %s1590_s17  ;;  %1212 = vrot.lane.b32.xlu0 %v1005_v48, %s1590_s17  ;;  %s1510_s17 = sshll.u32 %s1990_s26, 4 }
 0x27c   : > { %s504_s19 = scalar_lea.vmem %s1976_s1, %s1510_s17 }
 0x27f   : > { %1220 = vrot.lane.b32.xlu0 %v1873_v43, %s1591_s20  ;;  %1299 = vperm.xlu1 %1570, %v532_v55  }
 0x2d1   : > { %v1024_v58 = vpop.permute.xlu0 %1023  ;;  %v1032_v59 = vpop.permute.xlu1 %1031 }
 0x2d5   : > { %v1034_v60 = vpop.permute.xlu0 %1033  ;;  %v1040_v61 = vpop.permute.xlu1 %1039 }
 0x2d6   : > { %v1035_v62 = vsel %vm690_vm2, %v1032_v59, %v1034_v60  ;;  %v1036_v63 = vsel %vm690_vm2, %v1034_v60, %v1032_v59  ;;  %v1304_v59 = vld [vmem:[%s504_s19] sm:$0xff] }
 0x2d7   : > { %v1037_v1 = vmul.f32 %v1036_v63, %v1749_v28  ;;  %v1038_v2 = vmul.f32 %v1035_v62, %v1753_v30  ;;  %v1305_v62 = vld [vmem:[%s504_s19 + $0x8] sm:$0xff] }
 0x2d9   : > { %v1527_v3 = vpack.c.bf16 %v1005_v48, %v1037_v1  ;;  %v1042_v4 = vpop.permute.xlu0 %1041  ;;  %v1008_v5 = vpop.permute.xlu1 %1007  ;;  %v1525_v6 = vpack.c.bf16 %v1006_v50, %v1038_v2 }
 0x2da   : > { %v1044_v8 = vsel %vm707_vm3, %v1042_v4, %v1040_v61  ;;  %v1043_v9 = vsel %vm707_vm3, %v1040_v61, %v1042_v4 }
 0x2db   : > { %v1046_v13 = vmul.f32 %v1044_v8, %v1762_v36  ;;  %1526 = vmatprep.subr.bf16.mxu0 %v1525_v6  ;;  %v1045_v28 = vmul.f32 %v1043_v9, %v1767_v41 }
 0x2dc   : > { %1528 = vmatpush1.bf16.msra.mxu0 %v1527_v3 }
 0x2dd   : > { %v1010_v14 = vpop.permute.xlu0 %1009  ;;  %1056 = vmatprep.subr.mxu0 %v1046_v13  ;;  %v1016_v15 = vpop.permute.xlu1 %1015 }
 0x2de   : > { %v1011_v30 = vsel %vm639_vm4, %v1008_v5, %v1010_v14  ;;  %v1012_v18 = vsel %vm639_vm4, %v1010_v14, %v1008_v5 }
 0x2df   : > { %v1013_v41 = vmul.f32 %v1012_v18, %v1780_v51  ;;  %v1014_v23 = vmul.f32 %v1011_v30, %v1783_v52 }
 0x2e0   : > { %1057 = vmatpush1.msra.mxu0 %v1045_v28 }
 0x2e1   : > { %v1018_v19 = vpop.permute.xlu0 %1017  ;;  %1504 = vmatmul.mubr.msk.f32.vlgmr.msra.gmra.mrb[2].mxu0 %vm723_vm5, %v1049_v56  ;;  %v1026_v20 = vpop.permute.xlu1 %1025 }
 0x2e2   : > { %v1019_v36 = vsel %vm656_vm6, %v1016_v15, %v1018_v19  ;;  %v1020_v21 = vsel %vm656_vm6, %v1018_v19, %v1016_v15  ;;  %1189 = vmatprep.mubr.f32.mxu0 %v1580_v0  ;;  %v1027_v26 = vsel %vm673_vm7, %v1024_v58, %v1026_v20  ;;  %v1028_v34 = vsel %vm673_vm7, %v1026_v20, %v1024_v58 }
 0x2e3   : > { %v1021_v24 = vmul.f32 %v1020_v21, %v1787_v53  ;;  %v1022_v25 = vmul.f32 %v1019_v36, %v1790_v54  ;;  %v1030_v35 = vmul.f32 %v1027_v26, %v1798_v57  ;;  %v1029_v37 = vmul.f32 %v1028_v34, %v1817_v10 }
 0x2e5   : > { %v1531_v27 = vpack.c.bf16 %v1021_v24, %v1013_v41  ;;  %v1197_v29 = vpop.permute.xlu0 %1196  ;;  %v1199_v32 = vpop.permute.xlu1 %1198  ;;  %v1529_v33 = vpack.c.bf16 %v1022_v25, %v1014_v23 }
 0x2e6   : > { %v1200_v51 = vsel %vm874_vm8, %v1197_v29, %v1199_v32  ;;  %v1201_v52 = vsel %vm874_vm8, %v1199_v32, %v1197_v29 }
 0x2e7   : > { %1530 = vmatprep.subr.bf16.mxu0 %v1529_v33  ;;  %v1202_v57 = vmul.f32 %v1200_v51, %v1820_v11  ;;  %v1203_v7 = vmul.f32 %v1201_v52, %v1823_v12 }
 0x2e8   : > { %1532 = vmatpush1.bf16.msra.mxu0 %v1531_v27 }
 0x2e9   : > { %v1205_v53 = vpop.permute.xlu0 %1204  ;;  %1129 = vmatprep.subr.mxu0 %v1030_v35  ;;  %v1207_v54 = vpop.permute.xlu1 %1206 }
 0x2ea   : > { %v1208_v39 = vsel %vm891_vm9, %v1205_v53, %v1207_v54  ;;  %v1209_v40 = vsel %vm891_vm9, %v1207_v54, %v1205_v53 }
 0x2eb   : > { %v1210_v42 = vmul.f32 %v1208_v39, %v1831_v16  ;;  %v1211_v44 = vmul.f32 %v1209_v40, %v1834_v17 }
 0x2ec   : > { %1130 = vmatpush1.msra.mxu0 %v1029_v37 }
 0x2ed   : > { %v1535_v45 = vpack.c.bf16 %v1210_v42, %v1202_v57  ;;  %v1213_v46 = vpop.permute.xlu0 %1212  ;;  %1505 = vmatmul.mubr.msk.f32.vlgmr.msra.gmra.mrb[2].mxu0 %vm723_vm5, %v1873_v43  ;;  %v1215_v10 = vpop.permute.xlu1 %1214  ;;  %v1533_v47 = vpack.c.bf16 %v1211_v44, %v1203_v7 }
 0x2ee   : > { %v1217_v48 = vsel %vm908_vm10, %v1215_v10, %v1213_v46  ;;  %1288 = vmatprep.mubr.f32.mxu0 %v1580_v0  ;;  %v1216_v11 = vsel %vm908_vm10, %v1213_v46, %v1215_v10  ;;  %v1321_v0 = vld [vmem:[%s509_s30] sm:$0x77] }
 0x2ef   : > { %v1219_v12 = vmul.f32 %v1853_v31, %v1217_v48  ;;  %1534 = vmatprep.subr.bf16.mxu0 %v1533_v47  ;;  %v1218_v16 = vmul.f32 %v1863_v38, %v1216_v11  ;;  %v1323_v31 = vsub.f32 %v1321_v0, %v1322_v22 }
 0x2f0   : > { %1536 = vmatpush1.bf16.msra.mxu0 %v1535_v45 }
 0x2f1   : > { %1228 = vmatprep.subr.mxu0 %v1219_v12  ;;  %v1221_v17 = vpop.permute.xlu0 %1220  ;;  %v1324_v43 = vmul.f32 %v1323_v31, %v1323_v31 }
 0x2f3   : > { %v1326_v49 = vcombine.high %v1324_v43, %v1324_v43  ;;  %v1329_v38 = vsel %vm1328_vm11, %v1324_v43, 0.0 }
 0x2f4   : > { %1229 = vmatpush1.msra.mxu0 %v1218_v16 }
 0x2f5   : > { %1506 = vmatmul.mubr.msk.f32.vlgmr.msra.gmra.mrb[2].mxu0 %vm723_vm5, %v1221_v17  ;;  %v1330_v50 = vsel %vm1328_vm11, %v1326_v49, 0.0 }
 0x2f6   : > { %v1331_v55 = vadd.f32 %v1330_v50, %v1329_v38 }
 0x2f8   : > { %1332 = vadd.xlane.f32.xlu1 %v1331_v55 }
 0x2fe   : > { %v1300_v56 = vpop.permute.xlu1 %1299 }
 0x385   : > { %v1333_v6 = vpop.xlane.xlu1 %1332 }
 0x386   : > { %v1334_v8 = vrot.slane %v1333_v6, 4 }
 0x388   : > { %v1335_v9 = vadd.f32 %v1334_v8, %v1333_v6 }
 0x38a   : > { %v1336_v13 = vrot.slane %v1335_v9, 2 }
 0x38c   : > { %v1337_v30 = vadd.f32 %v1336_v13, %v1335_v9 }
 0x38e   : > { %v1338_v20 = vrot.slane %v1337_v30, 1 }
 0x390   : > { %v1339_v41 = vadd.f32 %v1338_v20, %v1337_v30 }
 0x3c8   : > { %v1290_v58 = vpop.f32.mrb[2].mxu0 }
 0x3c9   : > { %v1302_v60 = vadd.f32 %v1300_v56, %v1290_v58  ;;  %v1292_v61 = vpop.f32.mrb[3].mxu0 }
 0x3ca   : > { %v1303_v63 = vadd.f32 %v1300_v56, %v1292_v61 }
 0x3cb   : > { %v1306_v1 = vsub.f32 %v1302_v60, %v1304_v59 }
 0x3cc   : > { %v1307_v2 = vsub.f32 %v1303_v63, %v1305_v62 }
 0x3cd   : > { %v1308_v3 = vmul.f32 %v1306_v1, %v1306_v1 }
 0x3ce   : > { %v1309_v4 = vmul.f32 %v1307_v2, %v1307_v2 }
 0x3d0   : > { %v1310_v5 = vadd.f32 %v1309_v4, %v1308_v3 }
 0x3d2   : > { %1311 = vadd.xlane.f32.xlu0 %v1310_v5 }
 0x45f   : > { %v1312_v14 = vpop.xlane.xlu0 %1311 }
 0x460   : > { %v1313_v15 = vrot.slane %v1312_v14, 4 }
 0x462   : > { %v1314_v28 = vadd.f32 %v1313_v15, %v1312_v14 }
 0x464   : > { %v1315_v18 = vrot.slane %v1314_v28, 2 }
 0x466   : > { %v1316_v19 = vadd.f32 %v1315_v18, %v1314_v28 }
 0x468   : > { %v1317_v36 = vrot.slane %v1316_v19, 1 }
 0x46a   : > { %v1318_v21 = vadd.f32 %v1317_v36, %v1316_v19 }
 0x46c   : > { %1545 = vpush %v1318_v21 }
 0x46d   : > { %1547 = vpush %v1339_v41 }
 0x49d   : > { %s1546_s23 = spop %1545 }
 0x49e   : > { %v1342_v23 = vstv %s1546_s23  ;;  %s1548_s30 = spop %1547 }
 0x49f   : > { %1344 = vst [vmem:[%s522_s22] sm:$0xff] %v1342_v23  ;;  %v1345_v24 = vstv %s1548_s30 }
 0x4a0   : > { %1347 = vst [vmem:[%s526_s28] sm:$0xff] %v1345_v24 }
 0x4a1 PF: > { %s24_s25 = sadd.s32 1, %s1578_s25  }
 0x4a2   : > { %p21_p4 = scmp.ge.s32.totalorder %s24_s25, 4  }
 0x4a4   :  { %23 = sbr.rel (!%p21_p4) target bundleno = 1 (0x1), region = 122 }

</bundles_post_ra>
